<compile_context>
chip_gen: v7x
topology: tpu7x:2x2x1
jax: 0.10.0
libtpu: 0.0.40
codegen_flags: <defaults>
</compile_context>

<pallas_src>
import functools

import jax
import jax.numpy as jnp
import numpy as np
from jax import lax
from jax.experimental import pallas as pl
from jax.experimental.pallas import tpu as pltpu


def projection_kernel(x_ref, tw_ref, tb_ref, pw_ref, gw_ref, gb_ref,
                      theta_ref, phi_ref, g_ref, *, mxu_dtype):
    """theta/phi/g 1x1 convs as (C,C)@(C,tn) matmuls in channel-first layout."""
    xc = x_ref[0].astype(mxu_dtype)                                     # (C, tn)
    theta = jnp.dot(tw_ref[...].astype(mxu_dtype), xc,
                    preferred_element_type=jnp.float32) + tb_ref[...]
    # phi's bias is dropped: it adds a per-key constant to every score row and
    # cancels exactly in the softmax over keys.
    phi = jnp.dot(pw_ref[...].astype(mxu_dtype), xc,
                  preferred_element_type=jnp.float32)
    g = jnp.dot(gw_ref[...].astype(mxu_dtype), xc,
                preferred_element_type=jnp.float32) + gb_ref[...]
    theta_ref[0] = theta.astype(theta_ref.dtype)
    phi_ref[0] = phi.astype(phi_ref.dtype)
    g_ref[0] = g.astype(g_ref.dtype)


def flash_kernel(theta_ref, phi_ref, g_ref, xq_ref, ww_ref, wb_ref,
                 out_ref, m_sc, l_sc, acc_sc, *, mxu_dtype):
    ki = pl.program_id(2)

    @pl.when(ki == 0)
    def _init():
        m_sc[...] = jnp.full(m_sc.shape, -jnp.inf, dtype=m_sc.dtype)
        l_sc[...] = jnp.zeros(l_sc.shape, dtype=l_sc.dtype)
        acc_sc[...] = jnp.zeros(acc_sc.shape, dtype=acc_sc.dtype)

    # s[k, q] = sum_c phi[c, k] * theta[c, q] -- transposed flash layout so tq
    # stays on the 128-lane axis of every intermediate / scratch tensor.
    s = lax.dot_general(phi_ref[0], theta_ref[0],
                        dimension_numbers=(((0,), (0,)), ((), ())),
                        preferred_element_type=jnp.float32)             # (tk, tq)

    # Online-softmax update (f32 statistics and accumulator).
    m_prev = m_sc[...]                                                   # (1, tq)
    m_new = jnp.maximum(m_prev, jnp.max(s, axis=0, keepdims=True))
    alpha = jnp.exp(m_prev - m_new)
    p = jnp.exp(s - m_new)                                               # (tk, tq)
    l_sc[...] = alpha * l_sc[...] + jnp.sum(p, axis=0, keepdims=True)
    # acc[c, q] += sum_k g[c, k] * p[k, q]  (plain matmul, no folded transpose)
    acc_sc[...] = alpha * acc_sc[...] + jnp.dot(
        g_ref[0], p.astype(mxu_dtype), preferred_element_type=jnp.float32)
    m_sc[...] = m_new

    @pl.when(ki == pl.num_programs(2) - 1)
    def _finalize():
        # Softmax normalization folded into finalize: one (C, tq) multiply.
        # approx=True would move the divide to the EUP but its relative error
        # can exceed the 1e-4 self-test tolerance; kept exact (once per tile).
        y = acc_sc[...] * pl.reciprocal(l_sc[...], approx=False)        # (C, tq)
        # W 1x1 conv (inference BatchNorm folded in by the wrapper), residual.
        w_y = jnp.dot(ww_ref[...], y,
                      preferred_element_type=jnp.float32) + wb_ref[...]
        out_ref[0] = (w_y + xq_ref[0]).astype(out_ref.dtype)


def _vmem_limit(est_bytes):
    # Only override the scoped-VMEM default when the footprint estimate says
    # we must (matters for large C on v7x: 64 MiB physical, 32 MiB default).
    if 2 * est_bytes > 32 * 1024 * 1024:
        return int(min(2 * est_bytes, 112 * 1024 * 1024))
    return None


def nonlocal_block(x_nchw, gw, gb, tw, tb, pw, ww, wb, bn_scale, bn_shift,
                   *, tq=128, tk=128, mxu_dtype=jnp.float32, kv_buffers=3):
    """Non-local block forward.

    x_nchw: (B, C, H, W) float32.  Conv weights are (C_out, C_in)
    (= PyTorch conv weight[:, :, 0, 0]); biases / BN scale/shift are (C, 1).

    Tuning:
      v5e:     tq=tk=128, mxu_dtype=jnp.float32 (4x128^2 MXU, no bf16 VPU).
      v6e/v7x: tq=tk=256, mxu_dtype=jnp.bfloat16 (fills the 2x256^2 MXU and
               halves the HBM bytes of the re-read key/value tiles).
               Softmax stats / accumulator stay f32 regardless.
    """
    B, C, H, W = x_nchw.shape
    N = H * W
    x = x_nchw.reshape(B, C, N)       # channel-first: no HBM transpose passes

    tq = min(tq, N)
    tk = min(tk, N)
    if N % tq or N % tk:              # small / ragged inputs: fall back to one tile
        tq = tk = N
    tn = tk

    proj_dtype = jnp.dtype(mxu_dtype)
    ip = proj_dtype.itemsize
    Cp = -(-C // 8) * 8               # sublane-padded channel count (VMEM estimate)

    # ---- Pass 1: theta / phi / g projections, each computed exactly once. ----
    w_spec = pl.BlockSpec((C, C), lambda b, ni: (0, 0))
    b_spec = pl.BlockSpec((C, 1), lambda b, ni: (0, 0))
    x_spec = pl.BlockSpec((1, C, tn), lambda b, ni: (b, 0, ni))
    proj_vmem = (2 * Cp * tn * (4 + 3 * ip)            # x block + 3 out blocks (double-buffered)
                 + 2 * (3 * Cp * C + 2 * Cp) * 4)      # weights / biases
    proj_cost = pl.CostEstimate(
        flops=6 * B * N * C * C,
        transcendentals=0,
        bytes_accessed=B * N * C * (4 + 3 * ip) + (3 * C * C + 2 * C) * 4,
    )
    theta, phi, g = pl.pallas_call(
        functools.partial(projection_kernel, mxu_dtype=mxu_dtype),
        out_shape=tuple(jax.ShapeDtypeStruct((B, C, N), proj_dtype)
                        for _ in range(3)),
        grid=(B, N // tn),
        in_specs=[x_spec, w_spec, b_spec, w_spec, w_spec, b_spec],
        out_specs=tuple(pl.BlockSpec((1, C, tn), lambda b, ni: (b, 0, ni))
                        for _ in range(3)),
        compiler_params=pltpu.CompilerParams(
            dimension_semantics=("parallel", "parallel"),
            vmem_limit_bytes=_vmem_limit(proj_vmem)),
        cost_estimate=proj_cost,
    )(x, tw, tb, pw, gw, gb)

    # ---- Pass 2: flash attention + W conv (BN folded) + residual. ----
    # Fold inference BatchNorm into the W conv: scale*(W y + b) + shift.
    ww_f = bn_scale * ww
    wb_f = bn_scale * wb + bn_shift
    # TODO(synk): training-mode BatchNorm batch statistics are not computed
    # in-kernel; this is the inference-mode (folded running-stats) forward.

    n_kv = N // tk
    q_spec = pl.BlockSpec((1, C, tq), lambda b, qi, ki: (b, 0, qi))
    if kv_buffers > 2 and n_kv > kv_buffers:
        # Deeper buffering hides key/value tile DMA when per-step compute is
        # tiny (small C); costs one extra C*tk buffer per input.
        kv_spec = pl.BlockSpec((1, C, tk), lambda b, qi, ki: (b, 0, ki),
                               pipeline_mode=pl.Buffered(kv_buffers))
        nbuf = kv_buffers
    else:
        kv_spec = pl.BlockSpec((1, C, tk), lambda b, qi, ki: (b, 0, ki))
        nbuf = 2

    flash_vmem = (2 * Cp * tq * (ip + 4 + 4)            # theta + residual x + out blocks
                  + 2 * nbuf * Cp * tk * ip             # phi + g blocks
                  + 2 * (Cp * C + Cp) * 4               # folded W conv weight / bias
                  + (Cp + 16) * tq * 4                  # acc + m/l scratch
                  + 2 * tk * tq * 4)                    # s / p intermediates
    flash_cost = pl.CostEstimate(
        flops=B * (4 * N * N * C + 2 * N * C * C),
        transcendentals=B * N * N,
        # phi/g tiles are re-read once per query tile (the HBM roofline term).
        bytes_accessed=(B * N * C * (ip + 4 + 4)
                        + 2 * B * N * C * ip * (N // tq)
                        + (C * C + C) * 4),
    )
    out = pl.pallas_call(
        functools.partial(flash_kernel, mxu_dtype=mxu_dtype),
        out_shape=jax.ShapeDtypeStruct((B, C, N), x.dtype),
        grid=(B, N // tq, n_kv),
        in_specs=[q_spec,                                   # theta (query tile)
                  kv_spec, kv_spec,                         # phi / g (key tiles)
                  q_spec,                                   # x (residual)
                  pl.BlockSpec((C, C), lambda b, qi, ki: (0, 0)),   # folded W conv
                  pl.BlockSpec((C, 1), lambda b, qi, ki: (0, 0))],  # folded bias
        out_specs=pl.BlockSpec((1, C, tq), lambda b, qi, ki: (b, 0, qi)),
        scratch_shapes=[
            pltpu.VMEM((1, tq), jnp.float32),   # running max          (lane-dense)
            pltpu.VMEM((1, tq), jnp.float32),   # running denominator  (lane-dense)
            pltpu.VMEM((C, tq), jnp.float32),   # output accumulator (C on sublanes)
        ],
        compiler_params=pltpu.CompilerParams(
            dimension_semantics=("parallel", "parallel", "arbitrary"),
            vmem_limit_bytes=_vmem_limit(flash_vmem)),
        cost_estimate=flash_cost,
    )(theta, phi, g, x, ww_f, wb_f)

    return out.reshape(B, C, H, W)


def reference(x_nchw, gw, gb, tw, tb, pw, pb, ww, wb, bn_scale, bn_shift):
    """Pure-JAX reference of the PyTorch module (keeps the phi bias)."""
    B, C, H, W = x_nchw.shape
    N = H * W
    x = x_nchw.reshape(B, C, N)                               # (B, C, N)
    g_x = jnp.einsum("oc,bcn->bon", gw, x) + gb
    theta_x = jnp.einsum("oc,bcn->bon", tw, x) + tb
    phi_x = jnp.einsum("oc,bcn->bon", pw, x) + pb
    f = jnp.einsum("bcq,bck->bqk", theta_x, phi_x)            # (B, N, N)
    attn = jax.nn.softmax(f, axis=-1)
    y = jnp.einsum("bqk,bck->bcq", attn, g_x)                 # (B, C, N)
    w_y = jnp.einsum("oc,bcq->boq", ww, y) + wb
    w_y = w_y * bn_scale + bn_shift                           # inference BatchNorm
    z = w_y + x
    return z.reshape(B, C, H, W)


if __name__ == "__main__":
    B, C, H, W = 2, 4, 16, 16     # in_channel = 4 (module wants an even channel count)
    key = jax.random.PRNGKey(0)
    keys = jax.random.split(key, 16)

    x = jax.random.normal(keys[0], (B, C, H, W), dtype=jnp.float32)

    def w_init(k):  # Conv2d 1x1 weight as (C_out, C_in)  (== weight[:, :, 0, 0])
        return 0.1 * jax.random.normal(k, (C, C), dtype=jnp.float32)

    def b_init(k):  # bias / per-channel vector, broadcast over pixels -> (C, 1)
        return 0.1 * jax.random.normal(k, (C, 1), dtype=jnp.float32)

    gw, gb = w_init(keys[1]), b_init(keys[2])
    tw, tb = w_init(keys[3]), b_init(keys[4])
    pw, pb = w_init(keys[5]), b_init(keys[6])
    ww, wb = w_init(keys[7]), b_init(keys[8])

    # BatchNorm2d(C) in inference mode, folded into per-channel scale/shift.
    eps = 1e-5
    gamma = 1.0 + 0.1 * jax.random.normal(keys[9], (C, 1), dtype=jnp.float32)
    beta = 0.1 * jax.random.normal(keys[10], (C, 1), dtype=jnp.float32)
    running_mean = 0.1 * jax.random.normal(keys[11], (C, 1), dtype=jnp.float32)
    running_var = 0.5 + jnp.abs(0.5 * jax.random.normal(keys[12], (C, 1), dtype=jnp.float32))
    bn_scale = gamma / jnp.sqrt(running_var + eps)
    bn_shift = beta - running_mean * bn_scale

    # Kernel (phi bias not passed — it cancels exactly in the softmax).
    z = nonlocal_block(x, gw, gb, tw, tb, pw, ww, wb, bn_scale, bn_shift)
    z = jax.block_until_ready(z)

    z_ref = reference(x, gw, gb, tw, tb, pw, pb, ww, wb, bn_scale, bn_shift)
    np.testing.assert_allclose(np.asarray(z), np.asarray(z_ref), rtol=1e-4, atol=1e-4)

    print("KERNEL_OK")
</pallas_src>

<mosaic_0001>
module attributes {stable_mosaic.version = 11 : i64} {
  func.func @projection_kernel(%arg0: i32, %arg1: i32, %arg2: memref<1x4x128xf32, #tpu.memory_space<vmem>>, %arg3: memref<4x4xf32, #tpu.memory_space<vmem>>, %arg4: memref<4x1xf32, #tpu.memory_space<vmem>>, %arg5: memref<4x4xf32, #tpu.memory_space<vmem>>, %arg6: memref<4x4xf32, #tpu.memory_space<vmem>>, %arg7: memref<4x1xf32, #tpu.memory_space<vmem>>, %arg8: memref<1x4x128xf32, #tpu.memory_space<vmem>>, %arg9: memref<1x4x128xf32, #tpu.memory_space<vmem>>, %arg10: memref<1x4x128xf32, #tpu.memory_space<vmem>>) attributes {dimension_semantics = [#tpu.dimension_semantics<parallel>, #tpu.dimension_semantics<parallel>], iteration_bounds = array<i64: 2, 2>, scalar_prefetch = 0 : i64, scratch_operands = 0 : i64, tpu.core_type = #tpu.core_type<tc>, window_params = [{transform_indices = @transform_0, window_bounds = array<i64: 1, 4, 128>}, {pipeline_mode = #tpu.pipeline_mode<synchronous>, transform_indices = @transform_1, window_bounds = array<i64: 4, 4>}, {pipeline_mode = #tpu.pipeline_mode<synchronous>, transform_indices = @transform_2, window_bounds = array<i64: 4, 1>}, {pipeline_mode = #tpu.pipeline_mode<synchronous>, transform_indices = @transform_3, window_bounds = array<i64: 4, 4>}, {pipeline_mode = #tpu.pipeline_mode<synchronous>, transform_indices = @transform_4, window_bounds = array<i64: 4, 4>}, {pipeline_mode = #tpu.pipeline_mode<synchronous>, transform_indices = @transform_5, window_bounds = array<i64: 4, 1>}, {transform_indices = @transform_6, window_bounds = array<i64: 1, 4, 128>}, {transform_indices = @transform_7, window_bounds = array<i64: 1, 4, 128>}, {transform_indices = @transform_8, window_bounds = array<i64: 1, 4, 128>}]} {
    %c0 = arith.constant 0 : index
    %c0_0 = arith.constant 0 : index
    %c0_1 = arith.constant 0 : index
    %0 = vector.load %arg2[%c0, %c0_0, %c0_1] : memref<1x4x128xf32, #tpu.memory_space<vmem>>, vector<1x4x128xf32>
    %1 = vector.shape_cast %0 : vector<1x4x128xf32> to vector<4x128xf32>
    %c0_2 = arith.constant 0 : index
    %c0_3 = arith.constant 0 : index
    %2 = vector.load %arg3[%c0_2, %c0_3] : memref<4x4xf32, #tpu.memory_space<vmem>>, vector<4x4xf32>
    %cst = arith.constant dense<0.000000e+00> : vector<4x128xf32>
    %3 = tpu.matmul %2, %1, %cst {dimension_numbers = #tpu.dot_dimension_numbers<[1], [0], [0], [1], [0, 0, 1, 1], [], []>} : vector<4x4xf32>, vector<4x128xf32>, vector<4x128xf32> -> vector<4x128xf32>
    %c0_4 = arith.constant 0 : index
    %c0_5 = arith.constant 0 : index
    %4 = vector.load %arg4[%c0_4, %c0_5] : memref<4x1xf32, #tpu.memory_space<vmem>>, vector<4x1xf32>
    %5 = vector.broadcast %4 : vector<4x1xf32> to vector<4x128xf32>
    %6 = arith.addf %3, %5 : vector<4x128xf32>
    %c0_6 = arith.constant 0 : index
    %c0_7 = arith.constant 0 : index
    %7 = vector.load %arg5[%c0_6, %c0_7] : memref<4x4xf32, #tpu.memory_space<vmem>>, vector<4x4xf32>
    %cst_8 = arith.constant dense<0.000000e+00> : vector<4x128xf32>
    %8 = tpu.matmul %7, %1, %cst_8 {dimension_numbers = #tpu.dot_dimension_numbers<[1], [0], [0], [1], [0, 0, 1, 1], [], []>} : vector<4x4xf32>, vector<4x128xf32>, vector<4x128xf32> -> vector<4x128xf32>
    %c0_9 = arith.constant 0 : index
    %c0_10 = arith.constant 0 : index
    %9 = vector.load %arg6[%c0_9, %c0_10] : memref<4x4xf32, #tpu.memory_space<vmem>>, vector<4x4xf32>
    %cst_11 = arith.constant dense<0.000000e+00> : vector<4x128xf32>
    %10 = tpu.matmul %9, %1, %cst_11 {dimension_numbers = #tpu.dot_dimension_numbers<[1], [0], [0], [1], [0, 0, 1, 1], [], []>} : vector<4x4xf32>, vector<4x128xf32>, vector<4x128xf32> -> vector<4x128xf32>
    %c0_12 = arith.constant 0 : index
    %c0_13 = arith.constant 0 : index
    %11 = vector.load %arg7[%c0_12, %c0_13] : memref<4x1xf32, #tpu.memory_space<vmem>>, vector<4x1xf32>
    %12 = vector.broadcast %11 : vector<4x1xf32> to vector<4x128xf32>
    %13 = arith.addf %10, %12 : vector<4x128xf32>
    %c0_14 = arith.constant 0 : index
    %c0_15 = arith.constant 0 : index
    %c0_16 = arith.constant 0 : index
    %14 = vector.load %arg8[%c0_14, %c0_15, %c0_16] : memref<1x4x128xf32, #tpu.memory_space<vmem>>, vector<1x4x128xf32>
    %15 = vector.shape_cast %14 : vector<1x4x128xf32> to vector<4x128xf32>
    %16 = vector.shape_cast %6 : vector<4x128xf32> to vector<1x4x128xf32>
    tpu.vector_store %arg8[%c0_14, %c0_15, %c0_16], %16 {strides = array<i32>} : memref<1x4x128xf32, #tpu.memory_space<vmem>>, vector<1x4x128xf32>,
    %c0_17 = arith.constant 0 : index
    %c0_18 = arith.constant 0 : index
    %c0_19 = arith.constant 0 : index
    %17 = vector.load %arg9[%c0_17, %c0_18, %c0_19] : memref<1x4x128xf32, #tpu.memory_space<vmem>>, vector<1x4x128xf32>
    %18 = vector.shape_cast %17 : vector<1x4x128xf32> to vector<4x128xf32>
    %19 = vector.shape_cast %8 : vector<4x128xf32> to vector<1x4x128xf32>
    tpu.vector_store %arg9[%c0_17, %c0_18, %c0_19], %19 {strides = array<i32>} : memref<1x4x128xf32, #tpu.memory_space<vmem>>, vector<1x4x128xf32>,
    %c0_20 = arith.constant 0 : index
    %c0_21 = arith.constant 0 : index
    %c0_22 = arith.constant 0 : index
    %20 = vector.load %arg10[%c0_20, %c0_21, %c0_22] : memref<1x4x128xf32, #tpu.memory_space<vmem>>, vector<1x4x128xf32>
    %21 = vector.shape_cast %20 : vector<1x4x128xf32> to vector<4x128xf32>
    %22 = vector.shape_cast %13 : vector<4x128xf32> to vector<1x4x128xf32>
    tpu.vector_store %arg10[%c0_20, %c0_21, %c0_22], %22 {strides = array<i32>} : memref<1x4x128xf32, #tpu.memory_space<vmem>>, vector<1x4x128xf32>,
    return
  }
  func.func @transform_0(%arg0: i32, %arg1: i32) -> (i32, i32, i32) {
    %c0_i32 = arith.constant 0 : i32
    %c0_i32_0 = arith.constant 0 : i32
    return %arg0, %c0_i32, %arg1 : i32, i32, i32
  }
  func.func @transform_1(%arg0: i32, %arg1: i32) -> (i32, i32) {
    %c0_i32 = arith.constant 0 : i32
    %c0_i32_0 = arith.constant 0 : i32
    %c0_i32_1 = arith.constant 0 : i32
    return %c0_i32, %c0_i32_0 : i32, i32
  }
  func.func @transform_2(%arg0: i32, %arg1: i32) -> (i32, i32) {
    %c0_i32 = arith.constant 0 : i32
    %c0_i32_0 = arith.constant 0 : i32
    %c0_i32_1 = arith.constant 0 : i32
    return %c0_i32, %c0_i32_0 : i32, i32
  }
  func.func @transform_3(%arg0: i32, %arg1: i32) -> (i32, i32) {
    %c0_i32 = arith.constant 0 : i32
    %c0_i32_0 = arith.constant 0 : i32
    %c0_i32_1 = arith.constant 0 : i32
    return %c0_i32, %c0_i32_0 : i32, i32
  }
  func.func @transform_4(%arg0: i32, %arg1: i32) -> (i32, i32) {
    %c0_i32 = arith.constant 0 : i32
    %c0_i32_0 = arith.constant 0 : i32
    %c0_i32_1 = arith.constant 0 : i32
    return %c0_i32, %c0_i32_0 : i32, i32
  }
  func.func @transform_5(%arg0: i32, %arg1: i32) -> (i32, i32) {
    %c0_i32 = arith.constant 0 : i32
    %c0_i32_0 = arith.constant 0 : i32
    %c0_i32_1 = arith.constant 0 : i32
    return %c0_i32, %c0_i32_0 : i32, i32
  }
  func.func @transform_6(%arg0: i32, %arg1: i32) -> (i32, i32, i32) {
    %c0_i32 = arith.constant 0 : i32
    %c0_i32_0 = arith.constant 0 : i32
    return %arg0, %c0_i32, %arg1 : i32, i32, i32
  }
  func.func @transform_7(%arg0: i32, %arg1: i32) -> (i32, i32, i32) {
    %c0_i32 = arith.constant 0 : i32
    %c0_i32_0 = arith.constant 0 : i32
    return %arg0, %c0_i32, %arg1 : i32, i32, i32
  }
  func.func @transform_8(%arg0: i32, %arg1: i32) -> (i32, i32, i32) {
    %c0_i32 = arith.constant 0 : i32
    %c0_i32_0 = arith.constant 0 : i32
    return %arg0, %c0_i32, %arg1 : i32, i32, i32
  }
}

</mosaic_0001>

<bundles_post_ra>
// kernel: tpu_custom_call.1
= control target key start
LH: loop header
LB: loop body
LE: loop exit
PB: predicated region body
PF: predicated region fallthrough
CT: control target
= control target key end

     0   :  { %s1485_s0 = inlined_call_operand.hbm [shape: f32[2,4,256], index: 0, kind: input, shape index: {}]   ;;  %s1486_s1 = inlined_call_operand.vmem [shape: f32[4,4], index: 1, kind: input, shape index: {}]   ;;  %s1487_s2 = inlined_call_operand.vmem [shape: f32[4,1], index: 2, kind: input, shape index: {}]   ;;  %s1488_s3 = inlined_call_operand.vmem [shape: f32[4,4], index: 3, kind: input, shape index: {}]   ;;  %s1489_s4 = inlined_call_operand.vmem [shape: f32[4,4], index: 4, kind: input, shape index: {}]   ;;  %s1490_s5 = inlined_call_operand.vmem [shape: f32[4,1], index: 5, kind: input, shape index: {}]   ;;  %s1491_s6 = inlined_call_operand.hbm [shape: f32[2,4,256], index: 6, kind: output, shape index: {0}]   ;;  %s1492_s7 = inlined_call_operand.hbm [shape: f32[2,4,256], index: 7, kind: output, shape index: {1}]   ;;  %s1493_s8 = inlined_call_operand.hbm [shape: f32[2,4,256], index: 8, kind: output, shape index: {2}]  }
   0x1   :  { %1503 = sst [smem:[#allocation15_spill]] %s1485_s0 }
   0x2   :  { %1504 = sst [smem:[#allocation16_spill]] %s1486_s1 }
   0x3   :  { %1505 = sst [smem:[#allocation17_spill]] %s1487_s2 }
   0x4   :  { %1506 = sst [smem:[#allocation18_spill]] %s1488_s3 }
   0x5   :  { %1507 = sst [smem:[#allocation19_spill]] %s1491_s6 }
   0x6   :  { %1508 = sst [smem:[#allocation20_spill]] %s1492_s7 }
   0x7   :  { %1509 = sst [smem:[#allocation21_spill]] %s1493_s8 }
   0x8   :  { %14 = vsyncpa [#allocation3], 0 }
   0x9   :  { %16 = vsyncpa [#allocation3 + $0x1], 0 }
   0xa   :  { %17 = vsyncpa [#allocation4], 0 }
   0xb   :  { %19 = vsyncpa [#allocation4 + $0x1], 0 }
   0xc   :  { %20 = vsyncpa [#allocation7], 0 }
   0xd   :  { %22 = vsyncpa [#allocation7 + $0x1], 0  ;;  %s1194_s27 = smov 0   ;;  %s1196_s28 = smov 0  }
   0xe   :  { %s1198_s29 = smov 0   ;;  %s1200_s30 = smov 0  }
   0xf   :  { %s1202_s9 = smov 0   ;;  %s1204_s10 = smov 0  }
  0x10   :  { %s1206_s11 = smov 0   ;;  %s1208_s12 = smov 0  }
  0x11 LB: > { %1510 = sst [smem:[#allocation12_spill]] %s1112_s27  ;;  %s1235_s13 = sadd.s32 4294967295, %s1140_s12   ;;  %s1140_s12 = sphi %s1208_s12, %s28_s12   ;;  %s1136_s11 = sphi %s1206_s11, %s1540_s11   ;;  %s1132_s10 = sphi %s1204_s10, %s1539_s10   ;;  %s1128_s9 = sphi %s1202_s9, %s1538_s9   ;;  %s1124_s30 = sphi %s1200_s30, %s1537_s30   ;;  %s1120_s29 = sphi %s1198_s29, %s1536_s29   ;;  %s1116_s28 = sphi %s1196_s28, %s1535_s28   ;;  %s1112_s27 = sphi %s1194_s27, %s1534_s27  }
  0x12   : > { %s1500_s14 = sadd.s32 4294967294, %s1140_s12   ;;  %s37_s15 = sadd.s32 1, %s1132_s10 }
  0x13   : > { %s40_s16 = sadd.s32 1, %s1136_s11  ;;  %p38_p0 = scmp.ge.s32.totalorder %s37_s15, 2 }
  0x14   : > { %s49_s17 = sadd.s32 1, %s1120_s29  ;;  %p56_p1 = scmp.ne.s32.totalorder %s1120_s29, %s1116_s28 }
  0x15   : > { %p57_p2 = scmp.eq.s32.totalorder %s1140_s12, 0  ;;  %s1542_s15 = smov (%p38_p0, %s37_s15), 0 }
  0x16   : > { %1511 = sst [smem:[#allocation13_spill]] %s1542_s15  ;;  %s1544_s16 = smov (!%p38_p0, %s40_s16), %s1136_s11 }
  0x17   : > { %s45_s18 = ssub.s32 %s1132_s10, %s1542_s15  ;;  %p1249_p3 = por %p57_p2, %p56_p1 }
  0x18   : > { %p42_p4 = scmp.ge.s32.totalorder %s1544_s16, 2  ;;  %p62_p5 = scmp.ne.s32.totalorder %s1116_s28, %s1112_s27 }
  0x19   : > { %p63_p6 = scmp.eq.s32.totalorder %s1235_s13, 0  ;;  %p193_p7 = scmp.eq.s32.totalorder %s1235_s13, 3 }
  0x1a   : > { %s1546_s16 = smov (%p42_p4, %s1544_s16), 0  ;;  %p199_p10 = scmp.eq.s32.totalorder %s1500_s14, 3 }
  0x1b   : > { %1513 = sst [smem:[#allocation14_spill]] %s1546_s16  ;;  %p1259_p8 = por %p63_p6, %p62_p5 }
  0x1c   : > { %p1263_p9 = por %p193_p7, %p56_p1  ;;  %s44_s22 = ssub.s32 %s1136_s11, %s1546_s16 }
  0x1d   : > { %s46_s23 = sor.u32 %s45_s18, %s44_s22  ;;  %p1271_p12 = por %p199_p10, %p62_p5 }
  0x1e   : > { %s1515_s21 = scalar_select %p1263_p9, 1, 0 }
  0x1f   : > { %p47_p11 = scmp.eq.s32.totalorder %s46_s23, 0  ;;  %p882_p13 = scmp.lt.s32.totalorder %s1140_s12, 4 }
  0x20   : > { %s1516_s24 = scalar_select %p1271_p12, 1, 0 }
  0x21   : > { %s290_s25 = sand.u32 1, %s1120_s29   ;;  %s815_s27 = sshll.u32 %s1136_s11, 1 }
  0x22   : > { %s1278_s26 = scalar_select %p47_p11, %s1120_s29, %s49_s17  }
  0x23   : > { %s814_s15 = sshll.u32 %s290_s25, 2  ;;  %s299_s8 = sadd.s32 %s1132_s10, %s815_s27 }
  0x24   : > { %s294_s6 = scalar_lea.vmem [#allocation2], %s814_s15  ;;  %s816_s7 = sshll.u32 %s299_s8, 6 }
  0x25   : > { %s303_s16 = sshll.u32 %s294_s6, 4  ;;  %s1517_s0 = sld [smem:[#allocation15_spill]]  ;;  %s1282_s16 = int_to_ptr.vmem [resolvable:$true] %s303_s16 }
  0x26   : > { %p1291_p0 = pnand %p882_p13, %p1249_p3  ;;  %s291_s6 = scalar_lea.sflag [#allocation3], %s290_s25 }
  0x28   : > { %p954_p5 = pneg %p1291_p0 }
  0x2b   : > { %s1287_s22 = scalar_lea.hbm %s1517_s0, %s816_s7  ;;  %s957_s14 = scalar_lea.hbm %s1517_s0, 256 }
  0x2c   : > { %s952_s8 = scalar_lea.hbm %s1287_s22, 64  ;;  %p958_p3 = scmp.lt.u32.totalorder %s1287_s22, %s1517_s0 }
  0x2d   : > { %p953_p4 = scmp.ne.s32.totalorder %s1287_s22, %s952_s8  ;;  %p959_p10 = scmp.lt.u32.totalorder %s957_s14, %s952_s8 }
  0x2e   : > { %p961_p13 = scmp.lt.u32.totalorder %s952_s8, %s1287_s22 }
  0x2f   : > { %p955_p6 = pnand %p954_p5, %p953_p4  ;;  %p960_p11 = por %p959_p10, %p958_p3 }
  0x31   : > { %p956_p7 = pneg %p955_p6  ;;  %p962_p1 = por %p961_p13, %p960_p11 }
  0x33   : > { %p963_p2 = pnand %p962_p1, %p956_p7 }
  0x35   : > { %966 = shalt.err (!%p963_p2)
}
  0x36   : > { %s967_s23 = scalar_lea.vmem %s1282_s16, 64  ;;  %s1142_s25 = smov [#allocation2]  }
  0x37   : > { %p968_p4 = scmp.ne.s32.totalorder %s1282_s16, %s967_s23  ;;  %s972_s18 = sshll.u32 %s1142_s25, 4  ;;  %s973_s18 = int_to_ptr.vmem [resolvable:$false] %s972_s18 }
  0x38   : > { %s974_s7 = scalar_lea.vmem %s973_s18, 128  ;;  %p975_p9 = scmp.lt.s32.totalorder %s1282_s16, %s973_s18 }
  0x39   : > { %p970_p6 = pnand %p968_p4, %p954_p5  ;;  %p976_p3 = scmp.lt.s32.totalorder %s974_s7, %s967_s23 }
  0x3b   : > { %p971_p12 = pneg %p970_p6  ;;  %p977_p10 = por %p976_p3, %p975_p9 }
  0x3d   : > { %p978_p11 = pnand %p977_p10, %p971_p12 }
  0x3f   : > { %981 = shalt.err (!%p978_p11)
}
  0x40   : > { %871 = dma.hbm_to_vmem [thread:$0]  (!%p1291_p0), %s1287_s22, 64, %s1282_s16, %s291_s6  }
  0x41   : > { %p1519_p1 = scmp.lt.s32.totalorder %s1140_s12, 5  ;;  %p1520_p2 = scmp.ge.s32.totalorder %s1140_s12, 1 }
  0x43   : > { %p309_p5 = pnand %p1520_p2, %p1519_p1 }
  0x44   : > { %s1327_s8 = sand.u32 (!%p309_p5), 1, %s1116_s28  }
  0x45   : > { %312 = sbr.rel (%p309_p5) target bundleno = 366 (0x16e), region = 44  ;;  %s1330_s27 = sshll.u32 (!%p309_p5), %s1327_s8, 2 }
  0x46   : > { %s315_s14 = scalar_lea.sflag (!%p309_p5), [#allocation3], %s1327_s8  ;;  %s318_s17 = scalar_lea.vmem (!%p309_p5), [#allocation2], %s1330_s27 }
  0x4c   : > { %1099 = dma.done.wait (%p1259_p8), %s315_s14, 64  }
  0x4d   : > { %1101 = vsyncadd (%p1259_p8), %s315_s14, 4294967232  ;;  %v1143_v0 = vmov 0.0   ;;  %vm1144_vm0 = vmmov 0   ;;  %v1145_v1 = vmov 0   ;;  %vm373_vm1 = vcmask 1043456   ;;  %s1521_s1 = sld [smem:[#allocation16_spill]] }
  0x4e   : > { %845 = vmatprep.subr.mxu0 %v1143_v0  ;;  %847 = vmatprep.mubr.msk.f32.mxu0 %vm1144_vm0, %v1143_v0  ;;  %vm369_vm2 = vcmask 31744   ;;  %v361_v2 = vld [vmem:[%s318_s17] sm:$0xf]  ;;  %s1522_s3 = sld [smem:[#allocation18_spill]]  ;;  %s1523_s2 = sld [smem:[#allocation17_spill]] }
  0x4f   : > { %850 = vmatprep.subr.mxu1 %v1143_v0  ;;  %852 = vmatprep.mubr.msk.f32.mxu1 %vm1144_vm0, %v1143_v0  ;;  %v521_v6 = vld [vmem:[%s1489_s4] sm:$0xf]  ;;  %s831_s14 = sshll.u32 %s1128_s9, 1  ;;  %s353_s16 = scalar_lea.vmem [#allocation6], %s1330_s27 }
  0x50   : > { %951 = vset.pattern.permute.xlu0 %v1145_v1  ;;  %846 = vmatpush3.msk.msra.mxu0 %vm373_vm1, %v361_v2  ;;  %v522_v7 = vld [vmem:[%s1490_s5] sm:$0xf]  ;;  %s626_s17 = sadd.s32 %s1124_s30, %s831_s14  ;;  %s645_s22 = sshll.u32 %s353_s16, 4  ;;  %s1364_s22 = int_to_ptr.vmem [resolvable:$true] %s645_s22 }
  0x51   : > { %851 = vmatpush3.msk.msra.mxu1 %vm373_vm1, %v361_v2  ;;  %855 = vmatprep.subr.mxu0 %v1143_v0  ;;  %s609_s20 = sand.u32 1, %s1235_s13   ;;  %s832_s6 = sshll.u32 %s626_s17, 6 }
  0x52   : > { %s1502_s15 = scalar_lea.vmem [#allocation8], %s1330_s27  ;;  %s346_s23 = scalar_lea.vmem [#allocation5], %s1330_s27 }
  0x53   : > { %v362_v3 = vld [vmem:[%s1521_s1] sm:$0xf]  ;;  %s660_s19 = sshll.u32 %s1502_s15, 4  ;;  %s630_s25 = sshll.u32 %s346_s23, 4  ;;  %s1376_s25 = int_to_ptr.vmem [resolvable:$true] %s630_s25  ;;  %s1383_s19 = int_to_ptr.vmem [resolvable:$true] %s660_s19 }
  0x54   : > { %v447_v4 = vld [vmem:[%s1522_s3] sm:$0xf]  ;;  %848 = vmatmul.mubr.msk.f32.vlgmr.msra.gmra.mrb[0].mxu0 %vm369_vm2, %v362_v3  ;;  %s1524_s18 = sld [smem:[#allocation20_spill]]  ;;  %s1525_s17 = sld [smem:[#allocation19_spill]] }
  0x55   : > { %v363_v5 = vld [vmem:[%s1523_s2] sm:$0xf]  ;;  %856 = vmatpush3.msk.msra.mxu0 %vm373_vm1, %v361_v2  ;;  %857 = vmatprep.mubr.msk.f32.mxu0 %vm1144_vm0, %v1143_v0  ;;  %s1526_s2 = sld [smem:[#allocation21_spill]]  ;;  %s1385_s9 = scalar_lea.sflag [#allocation7], %s609_s20 }
  0x56   : > { %853 = vmatmul.mubr.msk.f32.vlgmr.msra.gmra.mrb[0].mxu1 %vm369_vm2, %v447_v4  ;;  %366 = vperm.xlu0 %951, %v363_v5   ;;  %s982_s30 = scalar_lea.vmem %s1364_s22, 64  ;;  %p1527_p9 = scmp.ne.s32.totalorder %s1515_s21, 0 }
  0x57   : > { %p983_p8 = scmp.ne.s32.totalorder %s1364_s22, %s982_s30 }
  0x58   : > { %858 = vmatmul.mubr.msk.f32.vlgmr.msra.gmra.mrb[2].mxu0 %vm369_vm2, %v521_v6 }
  0x59   : > { %p984_p12 = pnand %p983_p8, %p1527_p9 }
  0x5a   : > { %525 = vperm.xlu0 %951, %v522_v7   ;;  %s1369_s7 = scalar_lea.hbm %s1524_s18, %s832_s6  ;;  %s1374_s15 = scalar_lea.hbm %s1525_s17, %s832_s6 }
  0x5b   : > { %s1381_s3 = scalar_lea.hbm %s1526_s2, %s832_s6  ;;  %p985_p0 = pneg %p984_p12 }
  0xd5   : > { %v367_v8 = vpop.permute.xlu0 %366 }
  0xd9   : > { %v526_v14 = vpop.permute.xlu0 %525 }
 0x127   : > { %v443_v9 = vpop.f32.mrb[0].mxu0 }
 0x128   : > { %v444_v10 = vadd.f32 %v443_v9, %v367_v8  ;;  %v849_v11 = vpop.f32.mrb[1].mxu0 }
 0x129   : > { %v517_v12 = vpop.f32.mrb[0].mxu1 }
 0x12a   : > { %601 = vst [vmem:[%s346_s23] sm:$0xf] %v444_v10  ;;  %602 = vst [vmem:[%s353_s16] sm:$0xf] %v517_v12  ;;  %v854_v13 = vpop.f32.mrb[1].mxu1  ;;  %s1146_s23 = smov [#allocation6]  }
 0x12b   : > { %v597_v15 = vpop.f32.mrb[2].mxu0  ;;  %s986_s13 = sshll.u32 %s1146_s23, 4  ;;  %s987_s13 = int_to_ptr.vmem [resolvable:$false] %s986_s13 }
 0x12c   : > { %s988_s16 = scalar_lea.vmem %s987_s13, 128  ;;  %p989_p7 = scmp.lt.s32.totalorder %s1364_s22, %s987_s13 }
 0x12d   : > { %p990_p13 = scmp.lt.s32.totalorder %s988_s16, %s982_s30 }
 0x12f   : > { %p991_p4 = por %p990_p13, %p989_p7 }
 0x131   : > { %p992_p6 = pnand %p991_p4, %p985_p0 }
 0x133   : > { %995 = shalt.err (!%p992_p6)
}
 0x134   : > { %s996_s0 = scalar_lea.hbm %s1369_s7, 64  ;;  %s1000_s6 = scalar_lea.hbm %s1524_s18, 256 }
 0x135   : > { %p997_p3 = scmp.ne.s32.totalorder %s1369_s7, %s996_s0  ;;  %p1001_p1 = scmp.lt.u32.totalorder %s1369_s7, %s1524_s18 }
 0x136   : > { %p1002_p2 = scmp.lt.u32.totalorder %s1000_s6, %s996_s0  ;;  %p1004_p8 = scmp.lt.u32.totalorder %s996_s0, %s1369_s7 }
 0x137   : > { %p998_p10 = pnand %p997_p3, %p1527_p9 }
 0x138   : > { %p1003_p5 = por %p1002_p2, %p1001_p1 }
 0x139   : > { %p999_p11 = pneg %p998_p10 }
 0x13a   : > { %p1005_p12 = por %p1004_p8, %p1003_p5 }
 0x13c   : > { %p1006_p0 = pnand %p1005_p12, %p999_p11 }
 0x13e   : > { %1009 = shalt.err (!%p1006_p0)
}
 0x13f   : > { %863 = dma.vmem_to_hbm [thread:$0]  (%p1527_p9), %s1364_s22, 64, %s1369_s7, %s1385_s9   ;;  %v598_v16 = vadd.f32 %v597_v15, %v526_v14  ;;  %v859_v17 = vpop.f32.mrb[3].mxu0 }
 0x140   : > { %s605_s30 = scalar_lea.sflag [#allocation4], %s1327_s8  ;;  %s1010_s13 = scalar_lea.vmem %s1376_s25, 64 }
 0x141   : > { %p1011_p7 = scmp.ne.s32.totalorder %s1376_s25, %s1010_s13  ;;  %s1147_s16 = smov [#allocation5]  }
 0x142   : > { %s1014_s0 = sshll.u32 %s1147_s16, 4  ;;  %s1015_s0 = int_to_ptr.vmem [resolvable:$false] %s1014_s0 }
 0x143   : > { %p1012_p13 = pnand %p1011_p7, %p1527_p9  ;;  %s1016_s1 = scalar_lea.vmem %s1015_s0, 128 }
 0x144   : > { %p1017_p6 = scmp.lt.s32.totalorder %s1376_s25, %s1015_s0  ;;  %p1018_p3 = scmp.lt.s32.totalorder %s1016_s1, %s1010_s13 }
 0x145   : > { %p1013_p4 = pneg %p1012_p13 }
 0x146   : > { %p1019_p10 = por %p1018_p3, %p1017_p6 }
 0x148   : > { %p1020_p11 = pnand %p1019_p10, %p1013_p4 }
 0x14a   : > { %1023 = shalt.err (!%p1020_p11)
}
 0x14b   : > { %s1024_s8 = scalar_lea.hbm %s1374_s15, 64  ;;  %s1028_s20 = scalar_lea.hbm %s1525_s17, 256 }
 0x14c   : > { %p1025_p1 = scmp.ne.s32.totalorder %s1374_s15, %s1024_s8  ;;  %p1029_p8 = scmp.lt.u32.totalorder %s1374_s15, %s1525_s17 }
 0x14d   : > { %p1030_p12 = scmp.lt.u32.totalorder %s1028_s20, %s1024_s8  ;;  %p1032_p7 = scmp.lt.u32.totalorder %s1024_s8, %s1374_s15 }
 0x14e   : > { %p1026_p2 = pnand %p1025_p1, %p1527_p9 }
 0x14f   : > { %p1031_p0 = por %p1030_p12, %p1029_p8 }
 0x150   : > { %p1027_p5 = pneg %p1026_p2 }
 0x151   : > { %p1033_p13 = por %p1032_p7, %p1031_p0 }
 0x153   : > { %p1034_p4 = pnand %p1033_p13, %p1027_p5 }
 0x155   : > { %1037 = shalt.err (!%p1034_p4)
}
 0x156   : > { %862 = dma.vmem_to_hbm [thread:$0]  (%p1527_p9), %s1376_s25, 64, %s1374_s15, %s605_s30  }
 0x157   : > { %s1528_s23 = scalar_lea.vmem [#allocation8], %s1330_s27  ;;  %s1038_s13 = scalar_lea.vmem %s1383_s19, 64 }
 0x158   : > { %603 = vst [vmem:[%s1528_s23] sm:$0xf] %v598_v16  ;;  %p1039_p6 = scmp.ne.s32.totalorder %s1383_s19, %s1038_s13  ;;  %s1148_s16 = smov [#allocation8]  }
 0x159   : > { %s1042_s0 = sshll.u32 %s1148_s16, 4  ;;  %s1043_s0 = int_to_ptr.vmem [resolvable:$false] %s1042_s0 }
 0x15a   : > { %p1040_p3 = pnand %p1039_p6, %p1527_p9  ;;  %s1044_s1 = scalar_lea.vmem %s1043_s0, 128 }
 0x15b   : > { %p1045_p11 = scmp.lt.s32.totalorder %s1383_s19, %s1043_s0  ;;  %p1046_p1 = scmp.lt.s32.totalorder %s1044_s1, %s1038_s13 }
 0x15c   : > { %p1041_p10 = pneg %p1040_p3 }
 0x15d   : > { %p1047_p2 = por %p1046_p1, %p1045_p11 }
 0x15f   : > { %p1048_p5 = pnand %p1047_p2, %p1041_p10 }
 0x161   : > { %1051 = shalt.err (!%p1048_p5)
}
 0x162   : > { %s1052_s27 = scalar_lea.hbm %s1381_s3, 64  ;;  %s1056_s30 = scalar_lea.hbm %s1526_s2, 256 }
 0x163   : > { %p1053_p8 = scmp.ne.s32.totalorder %s1381_s3, %s1052_s27  ;;  %p1057_p7 = scmp.lt.u32.totalorder %s1381_s3, %s1526_s2 }
 0x164   : > { %p1058_p13 = scmp.lt.u32.totalorder %s1056_s30, %s1052_s27  ;;  %p1060_p6 = scmp.lt.u32.totalorder %s1052_s27, %s1381_s3 }
 0x165   : > { %p1054_p12 = pnand %p1053_p8, %p1527_p9 }
 0x166   : > { %p1059_p4 = por %p1058_p13, %p1057_p7 }
 0x167   : > { %p1055_p0 = pneg %p1054_p12 }
 0x168   : > { %p1061_p3 = por %p1060_p6, %p1059_p4 }
 0x16a   : > { %p1062_p10 = pnand %p1061_p3, %p1055_p0 }
 0x16c   : > { %1065 = shalt.err (!%p1062_p10)
}
 0x16d   : > { %864 = dma.vmem_to_hbm [thread:$0]  (%p1527_p9), %s1383_s19, 64, %s1381_s3, %s1385_s9  }
 0x16e PF: > { %s1529_s7 = sld [smem:[#allocation12_spill]]  ;;  %p883_p11 = scmp.ge.s32.totalorder %s1140_s12, 2 }
 0x16f   : > { %p1530_p1 = scmp.ne.s32.totalorder %s1516_s24, 0 }
 0x171   : > { %p873_p2 = pnand %p883_p11, %p1530_p1 }
 0x174   : > { %s672_s20 = sand.u32 1, %s1529_s7  }
 0x175   : > { %s673_s6 = scalar_lea.sflag [#allocation4], %s672_s20 }
 0x176   : > { %1103 = dma.done.wait (!%p873_p2), %s673_s6, 64  }
 0x177   : > { %1105 = vsyncadd (!%p873_p2), %s673_s6, 4294967232  ;;  %s1531_s14 = sadd.s32 4294967294, %s1140_s12  }
 0x178   : > { %s681_s23 = sand.u32 1, %s1531_s14  }
 0x179   : > { %s682_s13 = scalar_lea.sflag [#allocation7], %s681_s23 }
 0x17a   : > { %1107 = dma.done.wait (!%p873_p2), %s682_s13, 128  }
 0x17b   : > { %1109 = vsyncadd (!%p873_p2), %s682_s13, 4294967168  ;;  %s28_s12 = sadd.s32 1, %s1140_s12   ;;  %s1532_s3 = sld [smem:[#allocation13_spill]] }
 0x17c   : > { %p25_p9 = scmp.ge.s32.totalorder %s28_s12, 6   ;;  %s1533_s21 = sld [smem:[#allocation14_spill]] }
 0x17d   : > { %s1534_s27 = smov %s1116_s28  ;;  %s1535_s28 = smov %s1120_s29 }
 0x17e   : > { %s1536_s29 = smov %s1278_s26  ;;  %s1537_s30 = smov %s1132_s10 }
 0x17f   : > { %s1538_s9 = smov %s1136_s11  ;;  %27 = sbr.rel (!%p25_p9) target bundleno = 17 (0x11), region = 121 }
 0x181   : > { %s1539_s10 = smov %s1532_s3 }
 0x182   : > { %s1540_s11 = smov %s1533_s21 }
 0x186   :  { %696 = vsyncpa [#allocation3], 1 }
 0x187   :  { %698 = vsyncpa [#allocation3 + $0x1], 1 }
 0x188   :  { %699 = vsyncpa [#allocation4], 1 }
 0x189   :  { %701 = vsyncpa [#allocation4 + $0x1], 1 }
 0x18a   :  { %702 = vsyncpa [#allocation7], 1 }
 0x18b   :  { %704 = vsyncpa [#allocation7 + $0x1], 1 }

</bundles_post_ra>
